<compile_context>
chip_gen: v7x
topology: tpu7x:2x2x1
jax: 0.10.0
libtpu: 0.0.40
codegen_flags: <defaults>
</compile_context>

<pallas_src>
import jax
import jax.numpy as jnp
import numpy as np
from jax.experimental import pallas as pl
from jax.experimental.pallas import tpu as pltpu

EPS = 1e-07
_LANES = 128
_SUBLANES = 8


def _round_up(x: int, m: int) -> int:
    return ((x + m - 1) // m) * m


def _largest_divisor_leq(n: int, cap: int) -> int:
    cap = max(1, min(n, cap))
    for d in range(cap, 0, -1):
        if n % d == 0:
            return d
    return 1


def _pick_rt(r: int, max_rows: int) -> int:
    """Row-tile size: prefer an exact divisor of r (multiple of 8) near
    max_rows; otherwise use max_rows itself and mask the last row-block."""
    if r <= max_rows:
        return r
    cap = max(_SUBLANES, (max_rows // _SUBLANES) * _SUBLANES)
    d = cap
    while d >= max(_SUBLANES, cap // 4):
        if r % d == 0:
            return d                      # exact divisor: no tail masking
        d -= _SUBLANES
    return cap                            # no nice divisor: mask last block


def _make_loss_kernel(lam: float, bt: int, rt: int, r_total: int,
                      mask_rows: bool, clamp_pred: bool):
    def loss_kernel(pred_ref, gt_ref, out_ref):
        f32 = jnp.float32

        # ---------------- focal loss on channel 0 (one log per pixel) -------
        hp = pred_ref[:, 0, :, :].astype(f32)      # (bt, rt, 128)
        hg = gt_ref[:, 0, :, :].astype(f32)
        if clamp_pred:
            # bf16 preds can round to exactly 1.0 -> log(1 - p - eps) = NaN.
            hp = jnp.clip(hp, 0.0, 1.0 - 2.0 * EPS)
        one_m_hp = 1.0 - hp
        one_m_hg = 1.0 - hg
        pos = hg == 1.0
        # gt heatmaps live in [0, 1]: gt==1 is the positive branch, everything
        # else takes the negative branch (matches the reference for gt <= 1).
        lg = jnp.log(jnp.where(pos, hp + EPS, one_m_hp - EPS))
        nw2 = one_m_hg * one_m_hg
        w = jnp.where(pos, one_m_hp * one_m_hp, hp * hp * (nw2 * nw2))
        focal_elem = lg * w                         # = pos_loss + neg_loss

        # ---------------- L1 offset loss on channels 1:3 --------------------
        op0 = pred_ref[:, 1, :, :].astype(f32)
        op1 = pred_ref[:, 2, :, :].astype(f32)
        og0 = gt_ref[:, 1, :, :].astype(f32)
        og1 = gt_ref[:, 2, :, :].astype(f32)
        omask = (og0 + og1) > 0.0
        off_elem = (jnp.abs(jnp.where(omask, op0, 0.0) - og0) +
                    jnp.abs(jnp.where(omask, op1, 0.0) - og1))

        # per-pixel contribution: lam * offset - focal   (sum/B in wrapper)
        if lam == 1.0:
            contrib = off_elem - focal_elem
        else:
            contrib = lam * off_elem - focal_elem

        if mask_rows:
            # Last row-block of the grid runs past the true row count r: zero
            # the out-of-bounds rows instead of padding the inputs in HBM.
            valid = r_total - pl.program_id(1) * rt
            rid = jax.lax.broadcasted_iota(jnp.int32, (rt, _LANES), 0)
            contrib = jnp.where((rid < valid)[None, :, :], contrib, 0.0)

        # Fold to a single lane-dense (8,128) partial tile per grid step.
        if rt % _SUBLANES == 0:
            # Pure vreg adds: regroups whole (8,128) tiles (layout no-op).
            t = contrib.reshape(bt * (rt // _SUBLANES), _SUBLANES, _LANES)
            partial = jnp.sum(t, axis=0)
        else:
            # Tiny / odd row counts: cheap cross-sublane reduce, result in
            # sublane 0 of an otherwise-zero (8,128) tile.
            s = jnp.sum(contrib, axis=1, keepdims=True)   # (bt, 1, 128)
            s = jnp.sum(s, axis=0)                        # (1, 128)
            rid8 = jax.lax.broadcasted_iota(jnp.int32, (_SUBLANES, _LANES), 0)
            partial = jnp.where(rid8 == 0,
                                jnp.broadcast_to(s, (_SUBLANES, _LANES)), 0.0)

        out_ref[...] = partial.reshape(1, 1, _SUBLANES, _LANES)

    return loss_kernel


def fully_conv_loss(pred, gt, lam: float = 1.0,
                    target_block_bytes: int = 4 << 20):
    """pred, gt: [B, 3, H, W] (f32 or bf16). Returns scalar f32 loss."""
    B, C, H, W = pred.shape
    assert C == 3 and gt.shape == pred.shape

    HW = H * W
    itemsize = jnp.dtype(pred.dtype).itemsize

    # Lane-dense layout (B, C, r, 128).  When H*W is a multiple of 128 this is
    # a pure reshape (zero-copy).  Only otherwise do we pay one padded copy —
    # the reshape needs the flat spatial length to be a multiple of 128.
    HWp = HW if HW % _LANES == 0 else _round_up(HW, _SUBLANES * _LANES)
    r = HWp // _LANES

    def prep(x):
        x = x.reshape(B, C, HW)
        if HWp != HW:
            x = jnp.pad(x, ((0, 0), (0, 0), (0, HWp - HW)))
        return x.reshape(B, C, r, _LANES)

    p, g = prep(pred), prep(gt)

    # ---- tile-size heuristic (bt | B exactly; rt multiple of 8 or == r) ----
    # ~4 MiB per input block, but cap the rows so the kernel's f32 temporaries
    # stay well under v7x's 64 MiB VMEM (v5e/v6e have 128 MiB).
    max_rows = target_block_bytes // (C * _LANES * itemsize)
    max_rows = max(_SUBLANES, min(4096, (max_rows // _SUBLANES) * _SUBLANES))

    if r > max_rows:                 # large heatmaps: one image, tile rows
        bt = 1
        rt = _pick_rt(r, max_rows)
    else:                            # small heatmaps: whole image(s) per step
        rt = r
        bt = _largest_divisor_leq(B, max(1, max_rows // max(r, 1)))
        min_steps = 2 if B < 4 else 4      # keep v7x's 2nd TensorCore busy
        while bt > 1 and B // bt < min_steps:
            bt = _largest_divisor_leq(B, bt - 1)
        if B // bt < 2 and r >= 2 * _SUBLANES:
            # B == 1 (or indivisible): split rows instead so the grid still
            # has >= 2 steps (megacore sharding + DMA/compute overlap).
            rt = _pick_rt(r, max(_SUBLANES, ((r // 2) // _SUBLANES) * _SUBLANES))

    nb = B // bt
    nr = -(-r // rt)                       # cdiv
    mask_rows = (r % rt) != 0
    clamp_pred = jnp.dtype(pred.dtype) != jnp.float32

    kernel = _make_loss_kernel(float(lam), bt, rt, r, mask_rows, clamp_pred)

    out_bytes = nb * nr * _SUBLANES * _LANES * 4
    cost = pl.CostEstimate(
        flops=int(30 * B * HW),                # ~30 vreg ops per pixel
        transcendentals=int(B * HW),           # one log per heatmap pixel
        bytes_accessed=int(2 * B * C * HWp * itemsize + out_bytes),
    )

    partials = pl.pallas_call(
        kernel,
        out_shape=jax.ShapeDtypeStruct((nb, nr, _SUBLANES, _LANES), jnp.float32),
        grid_spec=pltpu.PrefetchScalarGridSpec(
            num_scalar_prefetch=0,
            grid=(nb, nr),
            in_specs=[
                pl.BlockSpec((bt, C, rt, _LANES), lambda bi, ri: (bi, 0, ri, 0)),
                pl.BlockSpec((bt, C, rt, _LANES), lambda bi, ri: (bi, 0, ri, 0)),
            ],
            out_specs=pl.BlockSpec((1, 1, _SUBLANES, _LANES),
                                   lambda bi, ri: (bi, ri, 0, 0)),
        ),
        compiler_params=pltpu.CompilerParams(
            # Disjoint output partials per grid step -> both axes parallel
            # (shards across both TensorCores on v7x; harmless on v5e/v6e).
            dimension_semantics=("parallel", "parallel"),
            # Covers 2 inputs x 2 pipeline buffers x ~4 MiB blocks plus the
            # f32 elementwise temporaries; also lifts v5e's 16 MiB default
            # scoped limit while staying under v7x's 64 MiB physical VMEM.
            vmem_limit_bytes=48 * 1024 * 1024,
        ),
        cost_estimate=cost,
    )(p, g)

    # batch_average=True in both sub-losses: divide the total sum by the true
    # B (masked / zero-padded pixels contribute exactly 0).
    return jnp.sum(partials) / jnp.float32(B)


def _reference_loss(pred, gt, lam: float = 1.0):
    """Pure-JAX reference mirroring the PyTorch module."""
    pred = pred.astype(jnp.float32)
    gt = gt.astype(jnp.float32)
    B = gt.shape[0]

    hp, hg = pred[:, 0], gt[:, 0]
    pos = (hg == 1.0).astype(jnp.float32)
    neg = (hg < 1.0).astype(jnp.float32)
    nw = (1.0 - hg) ** 4
    pos_l = jnp.sum(jnp.log(hp + EPS) * (1.0 - hp) ** 2 * pos)
    neg_l = jnp.sum(jnp.log(1.0 - hp - EPS) * hp ** 2 * nw * neg)
    focal = -(pos_l + neg_l) / B

    op, og = pred[:, 1:], gt[:, 1:]
    mask = ((og[:, 0] + og[:, 1]) > 0).astype(jnp.float32)
    off = (jnp.sum(jnp.abs(op[:, 0] * mask - og[:, 0])) +
           jnp.sum(jnp.abs(op[:, 1] * mask - og[:, 1]))) / B
    return focal + lam * off


if __name__ == "__main__":
    key = jax.random.PRNGKey(0)

    def make_inputs(k, B, H, W):
        k1, k2, k3, k4 = jax.random.split(k, 4)
        # pred in (0, 1) like post-sigmoid outputs
        pred = jax.random.uniform(k1, (B, 3, H, W), jnp.float32,
                                  minval=0.01, maxval=0.99)
        # gt heatmap in [0, 1) with a few exact 1.0 peaks; offsets sparse >= 0
        heat = jax.random.uniform(k2, (B, H, W), jnp.float32, 0.0, 0.9)
        peak = jax.random.uniform(k3, (B, H, W), jnp.float32) > 0.95
        heat = jnp.where(peak, 1.0, heat)
        offs = jax.random.uniform(k4, (B, 2, H, W), jnp.float32, 0.0, 1.0)
        offs = jnp.where(offs > 0.5, offs, 0.0)
        gt = jnp.concatenate([heat[:, None], offs], axis=1)
        return pred, gt

    k_a, k_b = jax.random.split(key)

    # Primary case (B=2, C=3, 16x16): no HBM padding, grid (2,1), tiny-fold path.
    pred, gt = make_inputs(k_a, 2, 16, 16)
    loss = fully_conv_loss(pred, gt, lam=1.0)
    jax.block_until_ready(loss)
    ref = _reference_loss(pred, gt, lam=1.0)
    np.testing.assert_allclose(np.asarray(loss), np.asarray(ref),
                               rtol=1e-4, atol=1e-4)

    # Secondary case (32x32, lam=0.5): exercises the (8,128) tile-fold path
    # used by realistically sized heatmaps, and the lam != 1 branch.
    pred2, gt2 = make_inputs(k_b, 2, 32, 32)
    loss2 = fully_conv_loss(pred2, gt2, lam=0.5)
    jax.block_until_ready(loss2)
    ref2 = _reference_loss(pred2, gt2, lam=0.5)
    np.testing.assert_allclose(np.asarray(loss2), np.asarray(ref2),
                               rtol=1e-4, atol=1e-4)

    print("KERNEL_OK")
</pallas_src>

<mosaic_0001>
module attributes {stable_mosaic.version = 11 : i64} {
  func.func @loss_kernel(%arg0: i32, %arg1: i32, %arg2: memref<1x3x2x128xf32, #tpu.memory_space<vmem>>, %arg3: memref<1x3x2x128xf32, #tpu.memory_space<vmem>>, %arg4: memref<1x1x8x128xf32, #tpu.memory_space<vmem>>) attributes {dimension_semantics = [#tpu.dimension_semantics<parallel>, #tpu.dimension_semantics<parallel>], iteration_bounds = array<i64: 2, 1>, scalar_prefetch = 0 : i64, scratch_operands = 0 : i64, tpu.core_type = #tpu.core_type<tc>, window_params = [{transform_indices = @transform_0, window_bounds = array<i64: 1, 3, 2, 128>}, {transform_indices = @transform_1, window_bounds = array<i64: 1, 3, 2, 128>}, {transform_indices = @transform_2, window_bounds = array<i64: 1, 1, 8, 128>}]} {
    %c0 = arith.constant 0 : index
    %c0_0 = arith.constant 0 : index
    %c0_1 = arith.constant 0 : index
    %c0_2 = arith.constant 0 : index
    %0 = vector.load %arg2[%c0, %c0_0, %c0_1, %c0_2] : memref<1x3x2x128xf32, #tpu.memory_space<vmem>>, vector<1x1x2x128xf32>
    %1 = vector.shape_cast %0 : vector<1x1x2x128xf32> to vector<1x2x128xf32>
    %c0_3 = arith.constant 0 : index
    %c0_4 = arith.constant 0 : index
    %c0_5 = arith.constant 0 : index
    %c0_6 = arith.constant 0 : index
    %2 = vector.load %arg3[%c0_3, %c0_4, %c0_5, %c0_6] : memref<1x3x2x128xf32, #tpu.memory_space<vmem>>, vector<1x1x2x128xf32>
    %3 = vector.shape_cast %2 : vector<1x1x2x128xf32> to vector<1x2x128xf32>
    %cst = arith.constant 1.000000e+00 : f32
    %4 = vector.broadcast %cst : f32 to vector<1x2x128xf32>
    %5 = arith.subf %4, %1 : vector<1x2x128xf32>
    %cst_7 = arith.constant 1.000000e+00 : f32
    %6 = vector.broadcast %cst_7 : f32 to vector<1x2x128xf32>
    %7 = arith.subf %6, %3 : vector<1x2x128xf32>
    %cst_8 = arith.constant 1.000000e+00 : f32
    %8 = vector.broadcast %cst_8 : f32 to vector<1x2x128xf32>
    %9 = arith.cmpf oeq, %3, %8 : vector<1x2x128xf32>
    %cst_9 = arith.constant 1.000000e-07 : f32
    %10 = vector.broadcast %cst_9 : f32 to vector<1x2x128xf32>
    %11 = arith.addf %1, %10 : vector<1x2x128xf32>
    %cst_10 = arith.constant 1.000000e-07 : f32
    %12 = vector.broadcast %cst_10 : f32 to vector<1x2x128xf32>
    %13 = arith.subf %5, %12 : vector<1x2x128xf32>
    %14 = arith.select %9, %11, %13 : vector<1x2x128xi1>, vector<1x2x128xf32>
    %15 = math.log %14 : vector<1x2x128xf32>
    %16 = arith.mulf %7, %7 : vector<1x2x128xf32>
    %17 = arith.mulf %5, %5 : vector<1x2x128xf32>
    %18 = arith.mulf %1, %1 : vector<1x2x128xf32>
    %19 = arith.mulf %16, %16 : vector<1x2x128xf32>
    %20 = arith.mulf %18, %19 : vector<1x2x128xf32>
    %21 = arith.select %9, %17, %20 : vector<1x2x128xi1>, vector<1x2x128xf32>
    %22 = arith.mulf %15, %21 : vector<1x2x128xf32>
    %c0_11 = arith.constant 0 : index
    %c1 = arith.constant 1 : index
    %c0_12 = arith.constant 0 : index
    %c0_13 = arith.constant 0 : index
    %23 = vector.load %arg2[%c0_11, %c1, %c0_12, %c0_13] : memref<1x3x2x128xf32, #tpu.memory_space<vmem>>, vector<1x1x2x128xf32>
    %24 = vector.shape_cast %23 : vector<1x1x2x128xf32> to vector<1x2x128xf32>
    %c0_14 = arith.constant 0 : index
    %c2 = arith.constant 2 : index
    %c0_15 = arith.constant 0 : index
    %c0_16 = arith.constant 0 : index
    %25 = vector.load %arg2[%c0_14, %c2, %c0_15, %c0_16] : memref<1x3x2x128xf32, #tpu.memory_space<vmem>>, vector<1x1x2x128xf32>
    %26 = vector.shape_cast %25 : vector<1x1x2x128xf32> to vector<1x2x128xf32>
    %c0_17 = arith.constant 0 : index
    %c1_18 = arith.constant 1 : index
    %c0_19 = arith.constant 0 : index
    %c0_20 = arith.constant 0 : index
    %27 = vector.load %arg3[%c0_17, %c1_18, %c0_19, %c0_20] : memref<1x3x2x128xf32, #tpu.memory_space<vmem>>, vector<1x1x2x128xf32>
    %28 = vector.shape_cast %27 : vector<1x1x2x128xf32> to vector<1x2x128xf32>
    %c0_21 = arith.constant 0 : index
    %c2_22 = arith.constant 2 : index
    %c0_23 = arith.constant 0 : index
    %c0_24 = arith.constant 0 : index
    %29 = vector.load %arg3[%c0_21, %c2_22, %c0_23, %c0_24] : memref<1x3x2x128xf32, #tpu.memory_space<vmem>>, vector<1x1x2x128xf32>
    %30 = vector.shape_cast %29 : vector<1x1x2x128xf32> to vector<1x2x128xf32>
    %31 = arith.addf %28, %30 : vector<1x2x128xf32>
    %cst_25 = arith.constant 0.000000e+00 : f32
    %32 = vector.broadcast %cst_25 : f32 to vector<1x2x128xf32>
    %33 = arith.cmpf ogt, %31, %32 : vector<1x2x128xf32>
    %cst_26 = arith.constant 0.000000e+00 : f32
    %34 = vector.broadcast %cst_26 : f32 to vector<1x2x128xf32>
    %35 = arith.select %33, %24, %34 : vector<1x2x128xi1>, vector<1x2x128xf32>
    %36 = arith.subf %35, %28 : vector<1x2x128xf32>
    %37 = math.absf %36 : vector<1x2x128xf32>
    %cst_27 = arith.constant 0.000000e+00 : f32
    %38 = vector.broadcast %cst_27 : f32 to vector<1x2x128xf32>
    %39 = arith.select %33, %26, %38 : vector<1x2x128xi1>, vector<1x2x128xf32>
    %40 = arith.subf %39, %30 : vector<1x2x128xf32>
    %41 = math.absf %40 : vector<1x2x128xf32>
    %42 = arith.addf %37, %41 : vector<1x2x128xf32>
    %43 = arith.subf %42, %22 : vector<1x2x128xf32>
    %cst_28 = arith.constant dense<0.000000e+00> : vector<1x128xf32>
    %44 = vector.multi_reduction <add>, %43, %cst_28 [1] : vector<1x2x128xf32> to vector<1x128xf32>
    %45 = vector.shape_cast %44 : vector<1x128xf32> to vector<1x1x128xf32>
    %cst_29 = arith.constant dense<0.000000e+00> : vector<1x128xf32>
    %46 = vector.multi_reduction <add>, %45, %cst_29 [0] : vector<1x1x128xf32> to vector<1x128xf32>
    %47 = tpu.iota {dimensions = array<i32: 0>} : vector<8x128xi32>
    %c0_i32 = arith.constant 0 : i32
    %48 = vector.broadcast %c0_i32 : i32 to vector<8x128xi32>
    %49 = arith.cmpi eq, %47, %48 : vector<8x128xi32>
    %50 = vector.shape_cast %46 : vector<1x128xf32> to vector<1x128xf32>
    %51 = vector.broadcast %50 : vector<1x128xf32> to vector<8x128xf32>
    %cst_30 = arith.constant 0.000000e+00 : f32
    %52 = vector.broadcast %cst_30 : f32 to vector<8x128xf32>
    %53 = arith.select %49, %51, %52 : vector<8x128xi1>, vector<8x128xf32>
    %54 = vector.shape_cast %53 : vector<8x128xf32> to vector<1x1x8x128xf32>
    %c0_31 = arith.constant 0 : index
    %c0_32 = arith.constant 0 : index
    %c0_33 = arith.constant 0 : index
    %c0_34 = arith.constant 0 : index
    %55 = vector.load %arg4[%c0_31, %c0_32, %c0_33, %c0_34] : memref<1x1x8x128xf32, #tpu.memory_space<vmem>>, vector<1x1x8x128xf32>
    tpu.vector_store %arg4[%c0_31, %c0_32, %c0_33, %c0_34], %54 {strides = array<i32>} : memref<1x1x8x128xf32, #tpu.memory_space<vmem>>, vector<1x1x8x128xf32>,
    return
  }
  func.func @transform_0(%arg0: i32, %arg1: i32) -> (i32, i32, i32, i32) {
    %c0_i32 = arith.constant 0 : i32
    %c0_i32_0 = arith.constant 0 : i32
    %c0_i32_1 = arith.constant 0 : i32
    return %arg0, %c0_i32, %arg1, %c0_i32_0 : i32, i32, i32, i32
  }
  func.func @transform_1(%arg0: i32, %arg1: i32) -> (i32, i32, i32, i32) {
    %c0_i32 = arith.constant 0 : i32
    %c0_i32_0 = arith.constant 0 : i32
    %c0_i32_1 = arith.constant 0 : i32
    return %arg0, %c0_i32, %arg1, %c0_i32_0 : i32, i32, i32, i32
  }
  func.func @transform_2(%arg0: i32, %arg1: i32) -> (i32, i32, i32, i32) {
    %c0_i32 = arith.constant 0 : i32
    %c0_i32_0 = arith.constant 0 : i32
    %c0_i32_1 = arith.constant 0 : i32
    return %arg0, %arg1, %c0_i32, %c0_i32_0 : i32, i32, i32, i32
  }
}

</mosaic_0001>

<bundles_post_ra>
// kernel: tpu_custom_call.1
= control target key start
LH: loop header
LB: loop body
LE: loop exit
PB: predicated region body
PF: predicated region fallthrough
CT: control target
= control target key end

     0   :  { %7 = vsyncpa [#allocation3], 0  ;;  %s890_s0 = inlined_call_operand.hbm [shape: f32[2,3,2,128], index: 0, kind: input, shape index: {}]   ;;  %s891_s1 = inlined_call_operand.hbm [shape: f32[2,3,2,128], index: 1, kind: input, shape index: {}]   ;;  %s892_s2 = inlined_call_operand.hbm [shape: f32[2,1,8,128], index: 2, kind: output, shape index: {}]  }
   0x1   :  { %9 = vsyncpa [#allocation3 + $0x1], 0 }
   0x2   :  { %10 = vsyncpa [#allocation6], 0 }
   0x3   :  { %12 = vsyncpa [#allocation6 + $0x1], 0 }
   0x4   :  { %13 = vsyncpa [#allocation4], 0 }
   0x5   :  { %15 = vsyncpa [#allocation4 + $0x1], 0  ;;  %s653_s9 = smov 0   ;;  %s655_s10 = smov 0  }
   0x6   :  { %s657_s11 = smov 0   ;;  %s659_s12 = smov 0  }
   0x7   :  { %s661_s13 = smov 0   ;;  %s663_s14 = smov 0  }
   0x8 LB: > { %s392_s15 = sadd.s32 4294967295, %s631_s14   ;;  %s393_s16 = sadd.s32 4294967294, %s631_s14   ;;  %s631_s14 = sphi %s663_s14, %s21_s14   ;;  %s627_s13 = sphi %s661_s13, %s910_s13   ;;  %s623_s12 = sphi %s659_s12, %s909_s12   ;;  %s619_s11 = sphi %s657_s11, %s908_s11   ;;  %s615_s10 = sphi %s655_s10, %s907_s10   ;;  %s611_s9 = sphi %s653_s9, %s906_s9  }
   0x9   : > { %s33_s17 = sadd.s32 1, %s627_s13  ;;  %s42_s18 = sadd.s32 1, %s619_s11 }
   0xa   : > { %p35_p0 = scmp.ge.s32.totalorder %s33_s17, 2  ;;  %p49_p1 = scmp.ne.s32.totalorder %s619_s11, %s615_s10 }
   0xb   : > { %p50_p2 = scmp.eq.s32.totalorder %s631_s14, 0  ;;  %p55_p3 = scmp.ne.s32.totalorder %s615_s10, %s611_s9 }
   0xc   : > { %s912_s17 = smov (%p35_p0, %s33_s17), 0  ;;  %p56_p5 = scmp.eq.s32.totalorder %s392_s15, 0 }
   0xd   : > { %p694_p4 = por %p50_p2, %p49_p1  ;;  %s37_s20 = ssub.s32 %s627_s13, %s912_s17 }
   0xe   : > { %p109_p6 = scmp.eq.s32.totalorder %s392_s15, 1  ;;  %p40_p7 = scmp.eq.s32.totalorder %s37_s20, 0 }
   0xf   : > { %p700_p8 = por %p56_p5, %p55_p3  ;;  %p115_p10 = scmp.eq.s32.totalorder %s393_s16, 1 }
  0x10   : > { %p704_p9 = por %p109_p6, %p49_p1  ;;  %p431_p13 = scmp.lt.s32.totalorder %s631_s14, 2 }
  0x11   : > { %s896_s21 = scalar_select %p700_p8, 1, 0 }
  0x12   : > { %s897_s22 = scalar_select %p704_p9, 1, 0 }
  0x13   : > { %s709_s23 = scalar_select %p40_p7, %s619_s11, %s42_s18  }
  0x14   : > { %p711_p11 = por %p115_p10, %p55_p3  ;;  %s718_s25 = sand.u32 1, %s619_s11  }
  0x15   : > { %s409_s26 = smul.u32 6, %s718_s25  ;;  %p724_p0 = pnand %p431_p13, %p694_p4 }
  0x16   : > { %s898_s24 = scalar_select %p711_p11, 1, 0 }
  0x17   : > { %s410_s27 = smul.u32 96, %s627_s13  ;;  %s139_s4 = scalar_lea.vmem [#allocation2], %s409_s26 }
  0x18   : > { %s147_s5 = sshll.u32 %s139_s4, 4  ;;  %s136_s6 = scalar_lea.sflag [#allocation3], %s718_s25  ;;  %s737_s5 = int_to_ptr.vmem [resolvable:$true] %s147_s5 }
  0x19   : > { %s733_s3 = scalar_lea.hbm %s890_s0, %s410_s27  ;;  %p487_p3 = pneg %p724_p0 }
  0x1a   : > { %s485_s7 = scalar_lea.hbm %s733_s3, 96  ;;  %s490_s16 = scalar_lea.hbm %s890_s0, 192 }
  0x1b   : > { %p486_p2 = scmp.ne.s32.totalorder %s733_s3, %s485_s7  ;;  %p491_p6 = scmp.lt.u32.totalorder %s733_s3, %s890_s0 }
  0x1c   : > { %p492_p7 = scmp.lt.u32.totalorder %s490_s16, %s485_s7  ;;  %p494_p13 = scmp.lt.u32.totalorder %s485_s7, %s733_s3 }
  0x1d   : > { %p488_p4 = pnand %p487_p3, %p486_p2 }
  0x1e   : > { %p493_p10 = por %p492_p7, %p491_p6 }
  0x1f   : > { %p489_p5 = pneg %p488_p4 }
  0x20   : > { %p495_p12 = por %p494_p13, %p493_p10 }
  0x22   : > { %p496_p1 = pnand %p495_p12, %p489_p5 }
  0x24   : > { %499 = shalt.err (!%p496_p1)
}
  0x25   : > { %s500_s20 = scalar_lea.vmem %s737_s5, 96  ;;  %s633_s29 = smov [#allocation2]  }
  0x26   : > { %p501_p2 = scmp.ne.s32.totalorder %s737_s5, %s500_s20  ;;  %s505_s30 = sshll.u32 %s633_s29, 4  ;;  %s506_s30 = int_to_ptr.vmem [resolvable:$false] %s505_s30 }
  0x27   : > { %s507_s4 = scalar_lea.vmem %s506_s30, 192  ;;  %p508_p9 = scmp.lt.s32.totalorder %s737_s5, %s506_s30 }
  0x28   : > { %p503_p4 = pnand %p501_p2, %p487_p3  ;;  %p509_p6 = scmp.lt.s32.totalorder %s507_s4, %s500_s20 }
  0x2a   : > { %p504_p11 = pneg %p503_p4  ;;  %p510_p7 = por %p509_p6, %p508_p9 }
  0x2c   : > { %p511_p10 = pnand %p510_p7, %p504_p11 }
  0x2e   : > { %514 = shalt.err (!%p511_p10)
}
  0x2f   : > { %s634_s7 = smov 32   ;;  %s635_s8 = smov 2  }
  0x30   : > { %423 = dma.hbm_to_vmem [thread:$0]  (!%p724_p0), %s733_s3, 96, %s737_s5, %s136_s6, %s634_s7, %s634_s7, %s635_s8  }
  0x31   : > { %p177_p9 = scmp.lt.s32.totalorder %s631_s14, 3  ;;  %s777_s18 = scalar_lea.hbm %s891_s1, %s410_s27 }
  0x32   : > { %p900_p11 = scmp.ge.s32.totalorder %s631_s14, 1  ;;  %s161_s20 = scalar_lea.vmem [#allocation5], %s409_s26 }
  0x33   : > { %s169_s29 = sshll.u32 %s161_s20, 4  ;;  %s158_s3 = scalar_lea.sflag [#allocation6], %s718_s25  ;;  %s787_s29 = int_to_ptr.vmem [resolvable:$true] %s169_s29 }
  0x34   : > { %p781_p12 = pnand %p900_p11, %p177_p9  ;;  %s515_s5 = scalar_lea.hbm %s777_s18, 96 }
  0x35   : > { %p516_p1 = scmp.ne.s32.totalorder %s777_s18, %s515_s5  ;;  %s520_s30 = scalar_lea.hbm %s891_s1, 192 }
  0x36   : > { %p521_p2 = scmp.lt.u32.totalorder %s777_s18, %s891_s1  ;;  %p522_p4 = scmp.lt.u32.totalorder %s520_s30, %s515_s5 }
  0x37   : > { %p518_p5 = pnand %p516_p1, %p487_p3  ;;  %p524_p7 = scmp.lt.u32.totalorder %s515_s5, %s777_s18 }
  0x38   : > { %p523_p6 = por %p522_p4, %p521_p2 }
  0x39   : > { %p519_p13 = pneg %p518_p5 }
  0x3a   : > { %p525_p10 = por %p524_p7, %p523_p6 }
  0x3c   : > { %p526_p9 = pnand %p525_p10, %p519_p13 }
  0x3e   : > { %529 = shalt.err (!%p526_p9)
}
  0x3f   : > { %s530_s26 = scalar_lea.vmem %s787_s29, 96  ;;  %s636_s16 = smov [#allocation5]  }
  0x40   : > { %p531_p11 = scmp.ne.s32.totalorder %s787_s29, %s530_s26  ;;  %s535_s20 = sshll.u32 %s636_s16, 4  ;;  %s536_s20 = int_to_ptr.vmem [resolvable:$false] %s535_s20 }
  0x41   : > { %s537_s27 = scalar_lea.vmem %s536_s20, 192  ;;  %p538_p8 = scmp.lt.s32.totalorder %s787_s29, %s536_s20 }
  0x42   : > { %p533_p1 = pnand %p531_p11, %p487_p3  ;;  %p539_p2 = scmp.lt.s32.totalorder %s537_s27, %s530_s26 }
  0x44   : > { %p534_p5 = pneg %p533_p1  ;;  %p540_p4 = por %p539_p2, %p538_p8 }
  0x46   : > { %p541_p6 = pnand %p540_p4, %p534_p5 }
  0x48   : > { %544 = shalt.err (!%p541_p6)
}
  0x49   : > { %426 = dma.hbm_to_vmem [thread:$0]  (!%p724_p0), %s777_s18, 96, %s787_s29, %s158_s3, %s634_s7, %s634_s7, %s635_s8  }
  0x4a   : > { %181 = sbr.rel (%p781_p12) target bundleno = 135 (0x87), region = 28  ;;  %s821_s5 = sand.u32 (!%p781_p12), 1, %s615_s10  }
  0x4b   : > { %s413_s6 = smul.u32 (!%p781_p12), 6, %s821_s5  ;;  %s184_s30 = scalar_lea.sflag (!%p781_p12), [#allocation3], %s821_s5 }
  0x4c   : > { %p902_p8 = scmp.ne.s32.totalorder (!%p781_p12), %s896_s21, 0 }
  0x4d   : > { %s187_s28 = scalar_lea.vmem (!%p781_p12), [#allocation2], %s413_s6 }
  0x51   : > { %598 = dma.done.wait (%p902_p8), %s184_s30, 96  }
  0x52   : > { %600 = vsyncadd (%p902_p8), %s184_s30, 4294967200  ;;  %s193_s25 = scalar_lea.sflag [#allocation6], %s821_s5  ;;  %s196_s7 = scalar_lea.vmem [#allocation5], %s413_s6 }
  0x53   : > { %602 = dma.done.wait (%p902_p8), %s193_s25, 96  }
  0x54   : > { %604 = vsyncadd (%p902_p8), %s193_s25, 4294967200  ;;  %v222_v0 = vld [vmem:[%s187_s28] sm:$0x3]  ;;  %v223_v1 = vld [vmem:[%s196_s7] sm:$0x3]  ;;  %vm257_vm2 = vcmask 1041408   ;;  %v266_v31 = vlaneseq }
  0x55   : > { %v224_v2 = vsub.f32 1.0, %v222_v0  ;;  %v225_v3 = vsub.f32 1.0, %v223_v1  ;;  %v227_v4 = vadd.f32 1e-07, %v222_v0  ;;  %vm226_vm0 = vcmp.eq.f32.partialorder %v223_v1, 1.0  ;;  %s399_s21 = sshll.u32 %s821_s5, 3 }
  0x56   : > { %v403_v5 = vld [vmem:[%s196_s7 + $0x2] sm:$0x3]  ;;  %v404_v6 = vld [vmem:[%s196_s7 + $0x4] sm:$0x3]  ;;  %v401_v8 = vld [vmem:[%s187_s28 + $0x2] sm:$0x3]  ;;  %v234_v15 = vmul.f32 %v222_v0, %v222_v0 }
  0x57   : > { %v400_v7 = vadd.f32 -1e-07, %v224_v2  ;;  %v402_v9 = vld [vmem:[%s187_s28 + $0x4] sm:$0x3]  ;;  %v247_v10 = vadd.f32 %v404_v6, %v403_v5  ;;  %v232_v11 = vmul.f32 %v225_v3, %v225_v3  ;;  %v233_v19 = vmul.f32 %v224_v2, %v224_v2  ;;  %s221_s8 = scalar_lea.vmem [#allocation7], %s399_s21  ;;  %s406_s19 = sshll.u32 %s623_s12, 7 }
  0x58   : > { %v267_v34 = vshrl.u32 %v266_v31, 7  ;;  %s286_s18 = sshll.u32 %s221_s8, 4  ;;  %s843_s4 = scalar_lea.hbm %s892_s2, %s406_s19  ;;  %s838_s18 = int_to_ptr.vmem [resolvable:$true] %s286_s18 }
  0x59   : > { %v229_v12 = vsel %vm226_vm0, %v227_v4, %v400_v7  ;;  %vm248_vm1 = vcmp.gt.f32.partialorder %v247_v10, 0.0  ;;  %v235_v16 = vmul.f32 %v232_v11, %v232_v11  ;;  %s272_s15 = scalar_lea.sflag [#allocation4], %s821_s5  ;;  %s545_s26 = scalar_lea.vmem %s838_s18, 128 }
  0x5a   : > { %483 = vlog2.f32 %v229_v12  ;;  %v249_v13 = vsel %vm248_vm1, %v401_v8, 0.0  ;;  %v252_v14 = vsel %vm248_vm1, %v402_v9, 0.0  ;;  %vm268_vm3 = vcmp.eq.s32.totalorder %v267_v34, 0  ;;  %p546_p0 = scmp.ne.s32.totalorder %s838_s18, %s545_s26  ;;  %p903_p3 = scmp.ne.s32.totalorder %s897_s22, 0 }
  0x5b   : > { %v250_v17 = vsub.f32 %v249_v13, %v403_v5  ;;  %v253_v18 = vsub.f32 %v252_v14, %v404_v6  ;;  %v236_v20 = vmul.f32 %v235_v16, %v234_v15  ;;  %s637_s12 = smov [#allocation7]  }
  0x5c   : > { %p547_p12 = pnand %p546_p0, %p903_p3  ;;  %s549_s16 = sshll.u32 %s637_s12, 4  ;;  %s550_s16 = int_to_ptr.vmem [resolvable:$false] %s549_s16 }
  0x5d   : > { %v251_v21 = vand.u32 2147483647, %v250_v17  ;;  %v254_v22 = vand.u32 2147483647, %v253_v18  ;;  %v237_v24 = vsel %vm226_vm0, %v233_v19, %v236_v20  ;;  %s551_s20 = scalar_lea.vmem %s550_s16, 256  ;;  %p552_p7 = scmp.lt.s32.totalorder %s838_s18, %s550_s16 }
  0x5e   : > { %p548_p13 = pneg %p547_p12  ;;  %p553_p10 = scmp.lt.s32.totalorder %s551_s20, %s545_s26 }
  0x5f   : > { %v255_v26 = vadd.f32 %v254_v22, %v251_v21 }
  0x60   : > { %p554_p9 = por %p553_p10, %p552_p7 }
  0x62   : > { %p555_p11 = pnand %p554_p9, %p548_p13 }
  0x64   : > { %v484_v23 = vpop.eup %483 }
  0x65   : > { %v231_v25 = vmul.f32 0.6931472, %v484_v23 }
  0x67   : > { %v238_v27 = vmul.f32 %v237_v24, %v231_v25 }
  0x69   : > { %v256_v28 = vsub.f32 %v255_v26, %v238_v27 }
  0x6b   : > { %v258_v29 = vsel %vm257_vm2, %v256_v28, 0.0 }
  0x6c   : > { %v259_v30 = vrot.slane %v258_v29, 4 }
  0x6e   : > { %v260_v32 = vadd.f32 %v259_v30, %v258_v29 }
  0x70   : > { %v261_v33 = vrot.slane %v260_v32, 2 }
  0x72   : > { %v262_v35 = vadd.f32 %v261_v33, %v260_v32 }
  0x74   : > { %v263_v36 = vrot.slane %v262_v35, 1 }
  0x76   : > { %v264_v37 = vadd.f32 %v263_v36, %v262_v35 }
  0x78   : > { %v269_v38 = vsel %vm268_vm3, %v264_v37, 0.0 }
  0x79   : > { %270 = vst [vmem:[%s221_s8] sm:$0xff] %v269_v38 }
  0x7a   : > { %558 = shalt.err (!%p555_p11)
}
  0x7b   : > { %s559_s27 = scalar_lea.hbm %s843_s4, 128  ;;  %s563_s30 = scalar_lea.hbm %s892_s2, 256 }
  0x7c   : > { %p560_p1 = scmp.ne.s32.totalorder %s843_s4, %s559_s27  ;;  %p564_p4 = scmp.lt.u32.totalorder %s843_s4, %s892_s2 }
  0x7d   : > { %p565_p6 = scmp.lt.u32.totalorder %s563_s30, %s559_s27  ;;  %p567_p0 = scmp.lt.u32.totalorder %s559_s27, %s843_s4 }
  0x7e   : > { %p561_p5 = pnand %p560_p1, %p903_p3 }
  0x7f   : > { %p566_p8 = por %p565_p6, %p564_p4 }
  0x80   : > { %p562_p2 = pneg %p561_p5 }
  0x81   : > { %p568_p12 = por %p567_p0, %p566_p8 }
  0x83   : > { %p569_p13 = pnand %p568_p12, %p562_p2 }
  0x85   : > { %572 = shalt.err (!%p569_p13)
}
  0x86   : > { %418 = dma.vmem_to_hbm [thread:$0]  (%p903_p3), %s838_s18, 128, %s843_s4, %s272_s15  }
  0x87 PF: > { %s298_s7 = sand.u32 1, %s611_s9   ;;  %p904_p7 = scmp.ne.s32.totalorder %s898_s24, 0 }
  0x88   : > { %p905_p10 = scmp.ge.s32.totalorder %s631_s14, 2  ;;  %s299_s21 = scalar_lea.sflag [#allocation4], %s298_s7 }
  0x8a   : > { %p428_p9 = pnand %p905_p10, %p904_p7 }
  0x8c   : > { %606 = dma.done.wait (!%p428_p9), %s299_s21, 128  }
  0x8d   : > { %608 = vsyncadd (!%p428_p9), %s299_s21, 4294967168  ;;  %s21_s14 = sadd.s32 1, %s631_s14   ;;  %s906_s9 = smov %s615_s10 }
  0x8e   : > { %p18_p11 = scmp.ge.s32.totalorder %s21_s14, 4   ;;  %s907_s10 = smov %s619_s11 }
  0x8f   : > { %s908_s11 = smov %s709_s23  ;;  %s909_s12 = smov %s627_s13 }
  0x90   : > { %s910_s13 = smov %s912_s17  ;;  %20 = sbr.rel (!%p18_p11) target bundleno = 8 (0x8), region = 90 }
  0x97   :  { %304 = vsyncpa [#allocation3], 1 }
  0x98   :  { %306 = vsyncpa [#allocation3 + $0x1], 1 }
  0x99   :  { %307 = vsyncpa [#allocation6], 1 }
  0x9a   :  { %309 = vsyncpa [#allocation6 + $0x1], 1 }
  0x9b   :  { %310 = vsyncpa [#allocation4], 1 }
  0x9c   :  { %312 = vsyncpa [#allocation4 + $0x1], 1 }

</bundles_post_ra>
